<compile_context>
chip_gen: v5e
topology: v5e:2x2
jax: 0.10.0
libtpu: 0.0.40
codegen_flags: <defaults>
</compile_context>

<pallas_src>
import jax
import jax.numpy as jnp
from jax.experimental import pallas as pl
from jax.experimental.pallas import tpu as pltpu


def _eca_kernel(band_ref, x_ref, o_ref):
    """One batch-block of images per grid step.

    band_ref: (C, C)       band matrix with the 1-D channel-conv weights baked in
    x_ref:    (bn, C, HW)  inputs, channels on sublanes, spatial on lanes
    o_ref:    (bn, C, HW)  outputs (same layout)
    """
    bn, _, hw = x_ref.shape
    inv_hw = 1.0 / hw

    x = x_ref[...].astype(jnp.float32)                         # (bn, C, HW)
    # Adaptive avg-pool: lane-axis reduction -> per-(b, c) mean.
    m = jnp.sum(x, axis=-1, keepdims=True) * inv_hw            # (bn, C, 1)
    band = band_ref[...]                                       # (C, C), f32

    # bn is a small static constant -> unrolled; each image does one tiny
    # (C,C)@(C,1) MXU matmul, EUP sigmoid, VPU broadcast-scale, lane-dense store.
    for b in range(bn):
        g = jnp.dot(band, m[b], preferred_element_type=jnp.float32)   # (C, 1)
        gate = jax.nn.sigmoid(g)
        o_ref[b] = (x[b] * gate).astype(o_ref.dtype)


def _pick_batch_block(n, c, hw, itemsize, vmem_budget=8 * 1024 * 1024, cap=8):
    """Largest divisor of n (<= cap) whose double-buffered in+out block fits budget."""
    per_image = c * hw * itemsize * 2 * 2          # input + output, double-buffered
    max_bn = max(1, min(cap, vmem_budget // max(per_image, 1)))
    bn = 1
    for d in range(1, n + 1):
        if n % d == 0 and d <= max_bn:
            bn = d
    return bn


def eca_forward(x_nchw, conv_weight):
    """ECA forward.  x_nchw: (N, C, H, W); conv_weight: (1, 1, K) from Conv1d."""
    N, C, H, W = x_nchw.shape
    HW = H * W
    w = conv_weight.reshape(-1).astype(jnp.float32)            # (K,)
    K = w.shape[0]
    pad = (K - 1) // 2

    # Band (Toeplitz) matrix A with A[c, j] = w[j - c + pad] for 0 <= j - c + pad < K,
    # else 0.  Bakes the conv taps and the zero padding at channel boundaries into one
    # dense (C, C) operand.
    ci = jnp.arange(C)[:, None]
    cj = jnp.arange(C)[None, :]
    off = cj - ci + pad
    band = jnp.where((off >= 0) & (off < K),
                     w[jnp.clip(off, 0, K - 1)],
                     0.0).astype(jnp.float32)                  # (C, C)

    # Contiguous reshape only (no transpose): spatial goes on the lane axis.
    x3 = x_nchw.reshape(N, C, HW)
    bn = _pick_batch_block(N, C, HW, x_nchw.dtype.itemsize)

    out3 = pl.pallas_call(
        _eca_kernel,
        out_shape=jax.ShapeDtypeStruct((N, C, HW), x_nchw.dtype),
        grid_spec=pltpu.PrefetchScalarGridSpec(
            num_scalar_prefetch=0,
            grid=(N // bn,),
            in_specs=[
                # Constant index_map -> weights stay VMEM-resident across the grid.
                pl.BlockSpec((C, C), lambda n: (0, 0)),
                pl.BlockSpec((bn, C, HW), lambda n: (n, 0, 0)),
            ],
            out_specs=pl.BlockSpec((bn, C, HW), lambda n: (n, 0, 0)),
        ),
        compiler_params=pltpu.CompilerParams(
            dimension_semantics=("parallel",),
            vmem_limit_bytes=32 * 1024 * 1024),
    )(band, x3)
    return out3.reshape(N, C, H, W)


def _reference_forward(x_nchw, conv_weight):
    """Pure-JAX reference mirroring the PyTorch module."""
    N, C, H, W = x_nchw.shape
    w = conv_weight.reshape(-1)
    K = w.shape[0]
    pad = (K - 1) // 2
    y = jnp.mean(x_nchw, axis=(2, 3))                          # (N, C)
    yp = jnp.pad(y, ((0, 0), (pad, pad)))                      # zero-padded channels
    conv = sum(w[k] * yp[:, k:k + C] for k in range(K))        # (N, C)
    gate = jax.nn.sigmoid(conv)
    return x_nchw * gate[:, :, None, None]


if __name__ == "__main__":
    # Small shapes consistent with the module: N=2, C=16, H=W=16, k_size=3.
    N, C, H, W = 2, 16, 16, 16

    key = jax.random.PRNGKey(0)
    kx, kw = jax.random.split(key)
    x = jax.random.normal(kx, (N, C, H, W), dtype=jnp.float32)
    # Conv1d(1, 1, kernel_size=3, bias=False).weight has shape (1, 1, 3).
    conv_weight = jax.random.normal(kw, (1, 1, 3), dtype=jnp.float32) * 0.5

    out = jax.block_until_ready(eca_forward(x, conv_weight))
    ref = jax.block_until_ready(_reference_forward(x, conv_weight))

    assert out.shape == (N, C, H, W)
    assert jnp.allclose(out, ref, atol=1e-4, rtol=1e-4), "mismatch vs reference"

    print("KERNEL_OK")
</pallas_src>

<mosaic_0001>
module attributes {stable_mosaic.version = 11 : i64} {
  func.func @_eca_kernel(%arg0: i32, %arg1: memref<16x16xf32, #tpu.memory_space<vmem>>, %arg2: memref<2x16x256xf32, #tpu.memory_space<vmem>>, %arg3: memref<2x16x256xf32, #tpu.memory_space<vmem>>) attributes {dimension_semantics = [#tpu.dimension_semantics<parallel>], iteration_bounds = array<i64: 1>, scalar_prefetch = 0 : i64, scratch_operands = 0 : i64, tpu.core_type = #tpu.core_type<tc>, window_params = [{pipeline_mode = #tpu.pipeline_mode<synchronous>, transform_indices = @transform_0, window_bounds = array<i64: 16, 16>}, {transform_indices = @transform_1, window_bounds = array<i64: 2, 16, 256>}, {transform_indices = @transform_2, window_bounds = array<i64: 2, 16, 256>}]} {
    %c0 = arith.constant 0 : index
    %c0_0 = arith.constant 0 : index
    %c0_1 = arith.constant 0 : index
    %0 = vector.load %arg2[%c0, %c0_0, %c0_1] : memref<2x16x256xf32, #tpu.memory_space<vmem>>, vector<2x16x256xf32>
    %cst = arith.constant dense<0.000000e+00> : vector<2x16xf32>
    %1 = vector.multi_reduction <add>, %0, %cst [2] : vector<2x16x256xf32> to vector<2x16xf32>
    %2 = vector.shape_cast %1 : vector<2x16xf32> to vector<2x16x1xf32>
    %cst_2 = arith.constant 3.906250e-03 : f32
    %3 = vector.broadcast %cst_2 : f32 to vector<2x16x1xf32>
    %4 = arith.mulf %2, %3 : vector<2x16x1xf32>
    %c0_3 = arith.constant 0 : index
    %c0_4 = arith.constant 0 : index
    %5 = vector.load %arg1[%c0_3, %c0_4] : memref<16x16xf32, #tpu.memory_space<vmem>>, vector<16x16xf32>
    %6 = vector.extract_strided_slice %4 {offsets = [0, 0, 0], sizes = [1, 16, 1], strides = [1, 1, 1]} : vector<2x16x1xf32> to vector<1x16x1xf32>
    %7 = vector.shape_cast %6 : vector<1x16x1xf32> to vector<16x1xf32>
    %cst_5 = arith.constant dense<0.000000e+00> : vector<16x1xf32>
    %8 = tpu.matmul %5, %7, %cst_5 {dimension_numbers = #tpu.dot_dimension_numbers<[1], [0], [0], [1], [0, 0, 1, 1], [], []>} : vector<16x16xf32>, vector<16x1xf32>, vector<16x1xf32> -> vector<16x1xf32>
    %9 = arith.negf %8 : vector<16x1xf32>
    %10 = math.exp %9 : vector<16x1xf32>
    %cst_6 = arith.constant 1.000000e+00 : f32
    %11 = vector.broadcast %cst_6 : f32 to vector<16x1xf32>
    %12 = arith.addf %11, %10 : vector<16x1xf32>
    %13 = arith.divf %11, %12 : vector<16x1xf32>
    %14 = vector.extract_strided_slice %0 {offsets = [0, 0, 0], sizes = [1, 16, 256], strides = [1, 1, 1]} : vector<2x16x256xf32> to vector<1x16x256xf32>
    %15 = vector.shape_cast %14 : vector<1x16x256xf32> to vector<16x256xf32>
    %16 = vector.broadcast %13 : vector<16x1xf32> to vector<16x256xf32>
    %17 = arith.mulf %15, %16 : vector<16x256xf32>
    %c0_7 = arith.constant 0 : index
    %c0_8 = arith.constant 0 : index
    %c0_9 = arith.constant 0 : index
    %18 = vector.load %arg3[%c0_7, %c0_8, %c0_9] : memref<2x16x256xf32, #tpu.memory_space<vmem>>, vector<1x16x256xf32>
    %19 = vector.shape_cast %18 : vector<1x16x256xf32> to vector<16x256xf32>
    %20 = vector.shape_cast %17 : vector<16x256xf32> to vector<1x16x256xf32>
    tpu.vector_store %arg3[%c0_7, %c0_8, %c0_9], %20 {strides = array<i32>} : memref<2x16x256xf32, #tpu.memory_space<vmem>>, vector<1x16x256xf32>,
    %21 = vector.extract_strided_slice %4 {offsets = [1, 0, 0], sizes = [1, 16, 1], strides = [1, 1, 1]} : vector<2x16x1xf32> to vector<1x16x1xf32>
    %22 = vector.shape_cast %21 : vector<1x16x1xf32> to vector<16x1xf32>
    %cst_10 = arith.constant dense<0.000000e+00> : vector<16x1xf32>
    %23 = tpu.matmul %5, %22, %cst_10 {dimension_numbers = #tpu.dot_dimension_numbers<[1], [0], [0], [1], [0, 0, 1, 1], [], []>} : vector<16x16xf32>, vector<16x1xf32>, vector<16x1xf32> -> vector<16x1xf32>
    %24 = arith.negf %23 : vector<16x1xf32>
    %25 = math.exp %24 : vector<16x1xf32>
    %cst_11 = arith.constant 1.000000e+00 : f32
    %26 = vector.broadcast %cst_11 : f32 to vector<16x1xf32>
    %27 = arith.addf %26, %25 : vector<16x1xf32>
    %28 = arith.divf %26, %27 : vector<16x1xf32>
    %29 = vector.extract_strided_slice %0 {offsets = [1, 0, 0], sizes = [1, 16, 256], strides = [1, 1, 1]} : vector<2x16x256xf32> to vector<1x16x256xf32>
    %30 = vector.shape_cast %29 : vector<1x16x256xf32> to vector<16x256xf32>
    %31 = vector.broadcast %28 : vector<16x1xf32> to vector<16x256xf32>
    %32 = arith.mulf %30, %31 : vector<16x256xf32>
    %c1 = arith.constant 1 : index
    %c0_12 = arith.constant 0 : index
    %c0_13 = arith.constant 0 : index
    %33 = vector.load %arg3[%c1, %c0_12, %c0_13] : memref<2x16x256xf32, #tpu.memory_space<vmem>>, vector<1x16x256xf32>
    %34 = vector.shape_cast %33 : vector<1x16x256xf32> to vector<16x256xf32>
    %35 = vector.shape_cast %32 : vector<16x256xf32> to vector<1x16x256xf32>
    tpu.vector_store %arg3[%c1, %c0_12, %c0_13], %35 {strides = array<i32>} : memref<2x16x256xf32, #tpu.memory_space<vmem>>, vector<1x16x256xf32>,
    return
  }
  func.func @transform_0(%arg0: i32) -> (i32, i32) {
    %c0_i32 = arith.constant 0 : i32
    %c0_i32_0 = arith.constant 0 : i32
    %c0_i32_1 = arith.constant 0 : i32
    return %c0_i32, %c0_i32_0 : i32, i32
  }
  func.func @transform_1(%arg0: i32) -> (i32, i32, i32) {
    %c0_i32 = arith.constant 0 : i32
    %c0_i32_0 = arith.constant 0 : i32
    %c0_i32_1 = arith.constant 0 : i32
    return %arg0, %c0_i32, %c0_i32_0 : i32, i32, i32
  }
  func.func @transform_2(%arg0: i32) -> (i32, i32, i32) {
    %c0_i32 = arith.constant 0 : i32
    %c0_i32_0 = arith.constant 0 : i32
    %c0_i32_1 = arith.constant 0 : i32
    return %arg0, %c0_i32, %c0_i32_0 : i32, i32, i32
  }
}

</mosaic_0001>

<bundles_post_ra>
// kernel: tpu_custom_call.1
= control target key start
LH: loop header
LB: loop body
LE: loop exit
PB: predicated region body
PF: predicated region fallthrough
CT: control target
= control target key end

     0   :  { %7 = vsyncpa [#allocation3], 0  ;;  %s443_s0 = inlined_call_operand.hbm [shape: f32[16,16], index: 0, kind: input, shape index: {}]   ;;  %s444_s1 = inlined_call_operand.hbm [shape: f32[2,16,256], index: 1, kind: input, shape index: {}]   ;;  %s445_s2 = inlined_call_operand.hbm [shape: f32[2,16,256], index: 2, kind: output, shape index: {}]  }
   0x1   :  { %8 = vsyncpa [#allocation6], 0 }
   0x2   :  { %9 = vsyncpa [#allocation4], 0  ;;  %s14_s11 = sshll.u32 %s443_s0, 4  ;;  %s373_s12 = smov [#allocation2]   ;;  %s15_s11 = int_to_ptr.hbm [resolvable:$true] %s14_s11 }
   0x3   :  { %s16_s13 = sshll.u32 %s373_s12, 4  ;;  %s27_s16 = sshll.u32 %s444_s1, 4  ;;  %s17_s13 = int_to_ptr.vmem [resolvable:$true] %s16_s13  ;;  %s28_s16 = int_to_ptr.hbm [resolvable:$true] %s27_s16 }
   0x4   :  { %s374_s17 = smov 128   ;;  %s375_s18 = smov 8  }
   0x5   :  { %22 = dma.hbm_to_vmem [thread:$0]  %s15_s11, 256, %s17_s13, [#allocation3], %s374_s17, %s374_s17, %s375_s18  }
   0x6   :  { %s376_s19 = smov [#allocation5]   ;;  %s377_s21 = smov 256  }
   0x7   :  { %s29_s20 = sshll.u32 %s376_s19, 4  ;;  %s378_s22 = smov 16   ;;  %s30_s20 = int_to_ptr.vmem [resolvable:$true] %s29_s20 }
   0x8   :  { %35 = dma.hbm_to_vmem [thread:$0]  %s28_s16, 1024, %s30_s20, [#allocation6], %s377_s21, %s377_s21, %s378_s22  }
   0x9   :  { %367 = dma.done.wait [#allocation3], 256  }
   0xa   :  { %368 = vsyncadd [#allocation3], 4294967040 }
   0xb   :  { %369 = dma.done.wait [#allocation6], 1024  }
   0xc   :  { %370 = vsyncadd [#allocation6], 4294966272  ;;  %v405_v0 = vld [vmem:[#allocation5 + $0x10] sm:$0xff]  ;;  %v407_v1 = vld [vmem:[#allocation5 + $0x18] sm:$0xff]  ;;  %vm70_vm0 = vcmask 130048   ;;  %v379_v22 = vmov 0  }
   0xd   :  { %v409_v2 = vld [vmem:[#allocation5] sm:$0xff]  ;;  %v55_v3 = vadd.f32 %v407_v1, %v405_v0  ;;  %v413_v4 = vld [vmem:[#allocation5 + $0x8] sm:$0xff]  ;;  %v417_v6 = vld [vmem:[#allocation5 + $0x30] sm:$0xff]  ;;  %277 = vset.pattern.permute.xlu0 %v379_v22  ;;  %278 = vset.pattern.permute.xlu1 %v379_v22  ;;  %s380_s0 = smov [#allocation7]   ;;  %s242_s25 = sshll.u32 %s445_s2, 4  ;;  %s243_s25 = int_to_ptr.hbm [resolvable:$true] %s242_s25 }
   0xe   :  { %v52_v5 = vadd.f32 %v413_v4, %v409_v2  ;;  %v419_v7 = vld [vmem:[#allocation5 + $0x38] sm:$0xff]  ;;  %v421_v8 = vld [vmem:[#allocation5 + $0x20] sm:$0xff]  ;;  %v423_v9 = vld [vmem:[#allocation5 + $0x28] sm:$0xff]  ;;  %276 = vset.pattern.permute.xlu2 %v379_v22  ;;  %s240_s1 = sshll.u32 %s380_s0, 4  ;;  %s241_s1 = int_to_ptr.vmem [resolvable:$true] %s240_s1 }
   0xf   :  { %56 = vadd.xlane.f32.xlu0 %v55_v3  ;;  %v61_v10 = vadd.f32 %v419_v7, %v417_v6  ;;  %v58_v11 = vadd.f32 %v423_v9, %v421_v8  ;;  %v68_v16 = vld [vmem:[#allocation2] sm:$0xff]  ;;  %v69_v17 = vld [vmem:[#allocation2 + $0x8] sm:$0xff] }
  0x10   :  { %53 = vadd.xlane.f32.xlu1 %v52_v5 }
  0x17   :  { %62 = vadd.xlane.f32.xlu0 %v61_v10 }
  0x18   :  { %59 = vadd.xlane.f32.xlu1 %v58_v11 }
  0x82   :  { %v57_v12 = vpop.xlane.xlu0 %56 }
  0x83   :  { %v65_v13 = vmul.f32 0.00390625, %v57_v12  ;;  %v54_v14 = vpop.xlane.xlu1 %53 }
  0x84   :  { %v64_v15 = vmul.f32 0.00390625, %v54_v14 }
  0x85   :  { %91 = vmatpush.msra.mxu0 %v65_v13  ;;  %264 = vmatpush.msra.mxu2 %v65_v13 }
  0x87   :  { %92 = vmatpush.msra.mxu0 %v64_v15  ;;  %265 = vmatpush.msra.mxu2 %v64_v15 }
  0x88   :  { %256 = vmatmul.msk.f32.vlgmr.msra.gmra.mxu0 %vm70_vm0, %v68_v16  ;;  %257 = vmatmul.msk.f32.vlgmr.msra.gmra.mxu2 %vm70_vm0, %v69_v17 }
  0x8a   :  { %v63_v18 = vpop.xlane.xlu0 %62 }
  0x8b   :  { %v67_v19 = vmul.f32 0.00390625, %v63_v18  ;;  %v60_v20 = vpop.xlane.xlu1 %59 }
  0x8c   :  { %v66_v21 = vmul.f32 0.00390625, %v60_v20 }
  0x8d   :  { %170 = vmatpush.msra.mxu1 %v67_v19  ;;  %266 = vmatpush.msra.mxu3 %v67_v19 }
  0x8f   :  { %171 = vmatpush.msra.mxu1 %v66_v21  ;;  %267 = vmatpush.msra.mxu3 %v66_v21 }
  0x90   :  { %260 = vmatmul.msk.f32.vlgmr.msra.gmra.mxu1 %vm70_vm0, %v68_v16  ;;  %261 = vmatmul.msk.f32.vlgmr.msra.gmra.mxu3 %vm70_vm0, %v69_v17 }
 0x105   :  { %v94_v23 = vpop.f32.mrf.mxu0 }
 0x106   :  { %v258_v24 = vmul.f32 -1.442695, %v94_v23 }
 0x108   :  { %279 = vpow2.f32 %v258_v24 }
 0x10b   :  { %v97_v25 = vpop.f32.mrf.mxu2 }
 0x10c   :  { %v259_v26 = vmul.f32 -1.442695, %v97_v25 }
 0x10d   :  { %v173_v27 = vpop.f32.mrf.mxu1 }
 0x10e   :  { %v280_v28 = vpop.eup %279  ;;  %v262_v29 = vmul.f32 -1.442695, %v173_v27  ;;  %281 = vpow2.f32 %v259_v26 }
 0x10f   :  { %v106_v30 = vadd.f32 1.0, %v280_v28 }
 0x110   :  { %283 = vpow2.f32 %v262_v29 }
 0x111   :  { %285 = vrcp.f32 %v106_v30  ;;  %v119_v39 = vand.u32 2147483648, %v106_v30  ;;  %vm113_vm1 = vweird.f32 %v106_v30  ;;  %v117_v41 = vand.u32 2147483647, %v106_v30 }
 0x113   :  { %v176_v31 = vpop.f32.mrf.mxu3  ;;  %v120_v46 = vor.u32 1.1754944e-38, %v119_v39  ;;  %vm118_vm4 = vcmp.eq.f32.partialorder %v117_v41, 8.507059e+37 }
 0x114   :  { %v282_v32 = vpop.eup %281  ;;  %v263_v33 = vmul.f32 -1.442695, %v176_v31 }
 0x115   :  { %v107_v34 = vadd.f32 1.0, %v282_v32 }
 0x116   :  { %v284_v35 = vpop.eup %283  ;;  %287 = vpow2.f32 %v263_v33 }
 0x117   :  { %v286_v36 = vpop.eup %285  ;;  %v185_v37 = vadd.f32 1.0, %v284_v35  ;;  %289 = vrcp.f32 %v107_v34  ;;  %vm128_vm5 = vweird.f32 %v107_v34  ;;  %v132_v50 = vand.u32 2147483647, %v107_v34 }
 0x118   :  { %v109_v38 = vmul.f32 %v286_v36, %v106_v30  ;;  %vm114_vm2 = vweird.f32 %v286_v36  ;;  %v134_v51 = vand.u32 2147483648, %v107_v34 }
 0x119   :  { %291 = vrcp.f32 %v185_v37  ;;  %vm115_vm3 = vmor %vm113_vm1, %vm114_vm2  ;;  %vm192_vm7 = vweird.f32 %v185_v37  ;;  %v196_v58 = vand.u32 2147483647, %v185_v37  ;;  %v198_v59 = vand.u32 2147483648, %v185_v37 }
 0x11a   :  { %v110_v40 = vsub.f32 1.0, %v109_v38  ;;  %v135_v60 = vor.u32 1.1754944e-38, %v134_v51  ;;  %vm133_vm10 = vcmp.eq.f32.partialorder %v132_v50, 8.507059e+37 }
 0x11b   :  { %v199_v11 = vor.u32 1.1754944e-38, %v198_v59  ;;  %vm197_vm12 = vcmp.eq.f32.partialorder %v196_v58, 8.507059e+37 }
 0x11c   :  { %v288_v42 = vpop.eup %287  ;;  %v111_v43 = vmul.f32 %v286_v36, %v110_v40 }
 0x11d   :  { %v290_v44 = vpop.eup %289  ;;  %v186_v45 = vadd.f32 1.0, %v288_v42 }
 0x11e   :  { %v112_v47 = vadd.f32 %v286_v36, %v111_v43  ;;  %v124_v48 = vmul.f32 %v290_v44, %v107_v34  ;;  %vm129_vm6 = vweird.f32 %v290_v44 }
 0x11f   :  { %v292_v49 = vpop.eup %291  ;;  %293 = vrcp.f32 %v186_v45  ;;  %vm130_vm8 = vmor %vm128_vm5, %vm129_vm6  ;;  %v213_v16 = vand.u32 2147483648, %v186_v45  ;;  %v211_v18 = vand.u32 2147483647, %v186_v45  ;;  %vm207_vm14 = vweird.f32 %v186_v45 }
 0x120   :  { %v188_v52 = vmul.f32 %v292_v49, %v185_v37  ;;  %v116_v53 = vsel %vm115_vm3, %v286_v36, %v112_v47  ;;  %v125_v54 = vsub.f32 1.0, %v124_v48  ;;  %vm193_vm9 = vweird.f32 %v292_v49 }
 0x121   :  { %v121_v55 = vsel %vm118_vm4, %v120_v46, %v116_v53  ;;  %vm194_vm11 = vmor %vm192_vm7, %vm193_vm9  ;;  %v214_v20 = vor.u32 1.1754944e-38, %v213_v16  ;;  %vm212_vm0 = vcmp.eq.f32.partialorder %v211_v18, 8.507059e+37 }
 0x122   :  { %v189_v56 = vsub.f32 1.0, %v188_v52  ;;  %140 = vperm.xlu2 %276, %v121_v55   ;;  %v126_v57 = vmul.f32 %v290_v44, %v125_v54 }
 0x124   :  { %v190_v61 = vmul.f32 %v292_v49, %v189_v56  ;;  %v127_v62 = vadd.f32 %v290_v44, %v126_v57 }
 0x125   :  { %v294_v63 = vpop.eup %293 }
 0x126   :  { %v191_v3 = vadd.f32 %v292_v49, %v190_v61  ;;  %v203_v5 = vmul.f32 %v294_v63, %v186_v45  ;;  %v131_v10 = vsel %vm130_vm8, %v290_v44, %v127_v62  ;;  %vm208_vm13 = vweird.f32 %v294_v63 }
 0x127   :  { %v136_v12 = vsel %vm133_vm10, %v135_v60, %v131_v10  ;;  %vm209_vm15 = vmor %vm207_vm14, %vm208_vm13 }
 0x128   :  { %v195_v13 = vsel %vm194_vm11, %v292_v49, %v191_v3  ;;  %v204_v14 = vsub.f32 1.0, %v203_v5 }
 0x129   :  { %v200_v15 = vsel %vm197_vm12, %v199_v11, %v195_v13 }
 0x12a   :  { %219 = vperm.xlu0 %277, %v200_v15   ;;  %v205_v17 = vmul.f32 %v294_v63, %v204_v14  ;;  %145 = vperm.xlu2 %276, %v136_v12  }
 0x12c   :  { %v206_v19 = vadd.f32 %v294_v63, %v205_v17 }
 0x12e   :  { %v210_v21 = vsel %vm209_vm15, %v294_v63, %v206_v19 }
 0x12f   :  { %v215_v22 = vsel %vm212_vm0, %v214_v20, %v210_v21 }
 0x130   :  { %224 = vperm.xlu1 %278, %v215_v22  }
 0x17c   :  { %v141_v23 = vpop.permute.xlu2 %140 }
 0x17d   :  { %v148_v24 = vmul.f32 %v141_v23, %v409_v2  ;;  %v149_v25 = vmul.f32 %v141_v23, %v413_v4 }
 0x17f   :  { %152 = vst [vmem:[#allocation7] sm:$0xff] %v148_v24 }
 0x180   :  { %153 = vst [vmem:[#allocation7 + $0x8] sm:$0xff] %v149_v25 }
 0x184   :  { %v146_v26 = vpop.permute.xlu2 %145 }
 0x185   :  { %v150_v27 = vmul.f32 %v146_v26, %v405_v0  ;;  %v151_v28 = vmul.f32 %v146_v26, %v407_v1 }
 0x187   :  { %154 = vst [vmem:[#allocation7 + $0x10] sm:$0xff] %v150_v27 }
 0x188   :  { %155 = vst [vmem:[#allocation7 + $0x18] sm:$0xff] %v151_v28 }
 0x19c   :  { %v220_v29 = vpop.permute.xlu0 %219 }
 0x19d   :  { %v227_v30 = vmul.f32 %v220_v29, %v421_v8  ;;  %v228_v31 = vmul.f32 %v220_v29, %v423_v9 }
 0x19f   :  { %232 = vst [vmem:[#allocation7 + $0x20] sm:$0xff] %v227_v30 }
 0x1a0   :  { %233 = vst [vmem:[#allocation7 + $0x28] sm:$0xff] %v228_v31 }
 0x1a2   :  { %v225_v2 = vpop.permute.xlu1 %224 }
 0x1a3   :  { %v229_v0 = vmul.f32 %v225_v2, %v417_v6  ;;  %v230_v1 = vmul.f32 %v225_v2, %v419_v7 }
 0x1a5   :  { %234 = vst [vmem:[#allocation7 + $0x30] sm:$0xff] %v229_v0 }
 0x1a6   :  { %235 = vst [vmem:[#allocation7 + $0x38] sm:$0xff] %v230_v1 }
 0x1a7   :  { %248 = dma.vmem_to_hbm [thread:$0]  %s241_s1, 1024, %s243_s25, [#allocation4], %s377_s21, %s377_s21, %s378_s22  }
 0x1a8   :  { %371 = dma.done.wait [#allocation4], 1024  }
 0x1a9   :  { %372 = vsyncadd [#allocation4], 4294966272 }
 0x1aa   :  { %253 = vsyncpa [#allocation3], 1 }
 0x1ab   :  { %254 = vsyncpa [#allocation6], 1 }
 0x1ac   :  { %255 = vsyncpa [#allocation4], 1 }

</bundles_post_ra>
